<compile_context>
chip_gen: v6e
topology: v6e:2x2x1
jax: 0.10.0
libtpu: 0.0.40
codegen_flags: <defaults>
</compile_context>

<pallas_src>
import math

import jax
import jax.numpy as jnp
from jax.experimental import pallas as pl
from jax.experimental.pallas import tpu as pltpu


def _round_up(x, m):
    return ((x + m - 1) // m) * m


def _mlp_kernel(x_ref, w1_ref, b1_ref, w2_ref, b2_ref, o_ref):
    # hidden = relu(x @ W1 + b1)  -- MXU matmul, f32 accumulation, f32 epilogue.
    x = x_ref[...].astype(w1_ref.dtype)
    h = jnp.dot(x, w1_ref[...], preferred_element_type=jnp.float32)
    h = jnp.maximum(h + b1_ref[...], 0.0)
    # out = sigmoid(h @ W2 + b2)
    y = jnp.dot(h.astype(w2_ref.dtype), w2_ref[...],
                preferred_element_type=jnp.float32)
    o_ref[...] = jax.nn.sigmoid(y + b2_ref[...]).astype(o_ref.dtype)


def prepare_params(w1, b1, w2, b2, *, compute_dtype=jnp.bfloat16):
    """One-time staging of the parameters for the kernel (call at init, not per step).

    Zero-pads the hidden dim H to a multiple of 128 (padded W1 columns + zero b1 give
    relu(0)=0 hidden units, and the matching zero W2 rows contribute nothing, so the
    math is exact) and casts the matmul operands to `compute_dtype`.  Biases stay f32.

    w1: [E, H], b1: [H] or [1, H], w2: [H, C], b2: [C] or [1, C]
    """
    f32 = jnp.float32
    E, H = w1.shape
    C = w2.shape[1]
    H_pad = _round_up(H, 128)

    b1 = jnp.reshape(jnp.asarray(b1, f32), (1, H))
    b2 = jnp.reshape(jnp.asarray(b2, f32), (1, C))

    w1_p = jnp.pad(w1.astype(f32), ((0, 0), (0, H_pad - H))).astype(compute_dtype)
    b1_p = jnp.pad(b1, ((0, 0), (0, H_pad - H)))
    w2_p = jnp.pad(w2.astype(f32), ((0, H_pad - H), (0, 0))).astype(compute_dtype)
    b2_p = b2
    return w1_p, b1_p, w2_p, b2_p


def _choose_tile_and_vmem(B, E, H_pad, C, mm_itemsize, block_b):
    """Pick a batch tile that fits a conservative per-TC VMEM budget (v7x: 64 MiB/TC)."""
    budget = 48 * 1024 * 1024
    tb = max(8, min(_round_up(block_b, 8), _round_up(B, 8)))

    def vmem_bytes(tb_):
        weights = (E * H_pad + H_pad * C) * mm_itemsize     # single-buffered residents
        biases = (H_pad + C) * 4
        x_blocks = 2 * tb_ * E * 4                          # double-buffered input tiles
        out_blocks = 2 * tb_ * C * 4                        # double-buffered output tiles
        hidden = tb_ * H_pad * (4 + mm_itemsize)            # f32 hidden + cast copy
        return weights + biases + x_blocks + out_blocks + hidden

    while tb > 8 and vmem_bytes(tb) > budget:
        tb = max(8, _round_up(tb // 2, 8))
    # Leave headroom for the double-buffered-weights fallback path; cap at v7x physical.
    limit = int(min(max(2 * vmem_bytes(tb), 16 * 1024 * 1024), 64 * 1024 * 1024))
    return tb, limit


def class_prediction_mlp(e_i, params, *, block_b=256):
    """Fused MLP forward: sigmoid(relu(e_i @ W1 + b1) @ W2 + b2).

    e_i:    [B, E] (any float dtype; cast to the matmul operand dtype inside the kernel)
    params: output of prepare_params()
    returns [B, C] float32 probabilities
    """
    w1_p, b1_p, w2_p, b2_p = params
    B, E = e_i.shape
    E_w, H_pad = w1_p.shape
    C = w2_p.shape[1]
    assert E == E_w, (E, E_w)

    mm_itemsize = jnp.dtype(w1_p.dtype).itemsize
    TB, vmem_limit = _choose_tile_and_vmem(B, E, H_pad, C, mm_itemsize, block_b)
    grid = (pl.cdiv(B, TB),)

    cost = pl.CostEstimate(
        flops=2 * B * (E * H_pad + H_pad * C),
        transcendentals=B * C,  # sigmoid
        bytes_accessed=(B * E * e_i.dtype.itemsize
                        + (E * H_pad + H_pad * C) * mm_itemsize
                        + (H_pad + C) * 4
                        + B * C * 4),
    )

    def build(single_buffer_weights):
        res_kw = {}
        if single_buffer_weights:
            # Constant index_map -> second pipeline buffer never used; drop it.
            res_kw = dict(pipeline_mode=pl.Buffered(1))
        in_specs = [
            # Activations walk the batch axis; last block may be ragged (rows are
            # independent; out-of-bounds output rows are masked on the store).
            pl.BlockSpec((TB, E), lambda i: (i, 0)),
            # Weights / biases: constant block index -> fetched once, VMEM-resident
            # across the whole grid loop.
            pl.BlockSpec((E, H_pad), lambda i: (0, 0), **res_kw),
            pl.BlockSpec((1, H_pad), lambda i: (0, 0), **res_kw),
            pl.BlockSpec((H_pad, C), lambda i: (0, 0), **res_kw),
            pl.BlockSpec((1, C), lambda i: (0, 0), **res_kw),
        ]
        return pl.pallas_call(
            _mlp_kernel,
            out_shape=jax.ShapeDtypeStruct((B, C), jnp.float32),
            grid_spec=pltpu.PrefetchScalarGridSpec(
                num_scalar_prefetch=0,
                grid=grid,
                in_specs=in_specs,
                out_specs=pl.BlockSpec((TB, C), lambda i: (i, 0)),
            ),
            compiler_params=pltpu.CompilerParams(
                dimension_semantics=("parallel",),
                vmem_limit_bytes=vmem_limit,
            ),
            cost_estimate=cost,
        )

    try:
        return build(True)(e_i, w1_p, b1_p, w2_p, b2_p)
    except Exception:
        # Fallback if this JAX build rejects pipeline_mode=pl.Buffered(1).
        return build(False)(e_i, w1_p, b1_p, w2_p, b2_p)


def init_params(key, embedding_dim, num_classes):
    """Deterministic init mirroring nn.Linear's default U(-1/sqrt(fan_in), 1/sqrt(fan_in))."""
    hidden_dim = embedding_dim
    k1, k2, k3, k4 = jax.random.split(key, 4)

    bound1 = 1.0 / math.sqrt(embedding_dim)
    w1 = jax.random.uniform(k1, (embedding_dim, hidden_dim), jnp.float32,
                            minval=-bound1, maxval=bound1)
    b1 = jax.random.uniform(k2, (1, hidden_dim), jnp.float32,
                            minval=-bound1, maxval=bound1)

    bound2 = 1.0 / math.sqrt(hidden_dim)
    w2 = jax.random.uniform(k3, (hidden_dim, num_classes), jnp.float32,
                            minval=-bound2, maxval=bound2)
    b2 = jax.random.uniform(k4, (1, num_classes), jnp.float32,
                            minval=-bound2, maxval=bound2)
    return w1, b1, w2, b2


if __name__ == "__main__":
    key = jax.random.PRNGKey(0)
    k_x, k_p = jax.random.split(key)

    batch = 8
    embedding_dim = 32
    num_classes = 16

    e_i = jax.random.normal(k_x, (batch, embedding_dim), jnp.float32)
    w1, b1, w2, b2 = init_params(k_p, embedding_dim, num_classes)

    # Stage (pad + bf16-cast) the weights once, outside the step function.
    params = prepare_params(w1, b1, w2, b2, compute_dtype=jnp.bfloat16)

    out = class_prediction_mlp(e_i, params)
    out = jax.block_until_ready(out)

    # Reference (same math as the PyTorch forward) in plain f32 JAX.
    h_ref = jnp.maximum(e_i @ w1 + b1, 0.0)
    ref = jax.nn.sigmoid(h_ref @ w2 + b2)

    assert out.shape == (batch, num_classes)
    max_err = float(jnp.max(jnp.abs(out - ref)))
    # bf16 MXU operands with f32 accumulation / epilogue: ~1e-2 tolerance.
    assert max_err < 2e-2, max_err

    print("KERNEL_OK")
</pallas_src>

<mosaic_0001>
module attributes {stable_mosaic.version = 11 : i64} {
  func.func @_mlp_kernel(%arg0: i32, %arg1: memref<8x32xf32, #tpu.memory_space<vmem>>, %arg2: memref<32x128xbf16, #tpu.memory_space<vmem>>, %arg3: memref<1x128xf32, #tpu.memory_space<vmem>>, %arg4: memref<128x16xbf16, #tpu.memory_space<vmem>>, %arg5: memref<1x16xf32, #tpu.memory_space<vmem>>, %arg6: memref<8x16xf32, #tpu.memory_space<vmem>>) attributes {dimension_semantics = [#tpu.dimension_semantics<parallel>], iteration_bounds = array<i64: 1>, scalar_prefetch = 0 : i64, scratch_operands = 0 : i64, tpu.core_type = #tpu.core_type<tc>, window_params = [{transform_indices = @transform_0, window_bounds = array<i64: 8, 32>}, {pipeline_mode = #tpu.pipeline_mode<synchronous>, transform_indices = @transform_1, window_bounds = array<i64: 32, 128>}, {pipeline_mode = #tpu.pipeline_mode<synchronous>, transform_indices = @transform_2, window_bounds = array<i64: 1, 128>}, {pipeline_mode = #tpu.pipeline_mode<synchronous>, transform_indices = @transform_3, window_bounds = array<i64: 128, 16>}, {pipeline_mode = #tpu.pipeline_mode<synchronous>, transform_indices = @transform_4, window_bounds = array<i64: 1, 16>}, {transform_indices = @transform_5, window_bounds = array<i64: 8, 16>}]} {
    %c0 = arith.constant 0 : index
    %c0_0 = arith.constant 0 : index
    %0 = vector.load %arg1[%c0, %c0_0] : memref<8x32xf32, #tpu.memory_space<vmem>>, vector<8x32xf32>
    %1 = arith.truncf %0 : vector<8x32xf32> to vector<8x32xbf16>
    %c0_1 = arith.constant 0 : index
    %c0_2 = arith.constant 0 : index
    %2 = vector.load %arg2[%c0_1, %c0_2] : memref<32x128xbf16, #tpu.memory_space<vmem>>, vector<32x128xbf16>
    %cst = arith.constant dense<0.000000e+00> : vector<8x128xf32>
    %3 = tpu.matmul %1, %2, %cst {dimension_numbers = #tpu.dot_dimension_numbers<[1], [0], [0], [1], [0, 0, 1, 1], [], []>} : vector<8x32xbf16>, vector<32x128xbf16>, vector<8x128xf32> -> vector<8x128xf32>
    %c0_3 = arith.constant 0 : index
    %c0_4 = arith.constant 0 : index
    %4 = vector.load %arg3[%c0_3, %c0_4] : memref<1x128xf32, #tpu.memory_space<vmem>>, vector<1x128xf32>
    %5 = vector.broadcast %4 : vector<1x128xf32> to vector<8x128xf32>
    %6 = arith.addf %3, %5 : vector<8x128xf32>
    %cst_5 = arith.constant 0.000000e+00 : f32
    %7 = vector.broadcast %cst_5 : f32 to vector<8x128xf32>
    %8 = arith.maximumf %6, %7 : vector<8x128xf32>
    %9 = arith.truncf %8 : vector<8x128xf32> to vector<8x128xbf16>
    %c0_6 = arith.constant 0 : index
    %c0_7 = arith.constant 0 : index
    %10 = vector.load %arg4[%c0_6, %c0_7] : memref<128x16xbf16, #tpu.memory_space<vmem>>, vector<128x16xbf16>
    %cst_8 = arith.constant dense<0.000000e+00> : vector<8x16xf32>
    %11 = tpu.matmul %9, %10, %cst_8 {dimension_numbers = #tpu.dot_dimension_numbers<[1], [0], [0], [1], [0, 0, 1, 1], [], []>} : vector<8x128xbf16>, vector<128x16xbf16>, vector<8x16xf32> -> vector<8x16xf32>
    %c0_9 = arith.constant 0 : index
    %c0_10 = arith.constant 0 : index
    %12 = vector.load %arg5[%c0_9, %c0_10] : memref<1x16xf32, #tpu.memory_space<vmem>>, vector<1x16xf32>
    %13 = vector.broadcast %12 : vector<1x16xf32> to vector<8x16xf32>
    %14 = arith.addf %11, %13 : vector<8x16xf32>
    %15 = arith.negf %14 : vector<8x16xf32>
    %16 = math.exp %15 : vector<8x16xf32>
    %cst_11 = arith.constant 1.000000e+00 : f32
    %17 = vector.broadcast %cst_11 : f32 to vector<8x16xf32>
    %18 = arith.addf %17, %16 : vector<8x16xf32>
    %19 = arith.divf %17, %18 : vector<8x16xf32>
    %c0_12 = arith.constant 0 : index
    %c0_13 = arith.constant 0 : index
    %20 = vector.load %arg6[%c0_12, %c0_13] : memref<8x16xf32, #tpu.memory_space<vmem>>, vector<8x16xf32>
    tpu.vector_store %arg6[%c0_12, %c0_13], %19 {strides = array<i32>} : memref<8x16xf32, #tpu.memory_space<vmem>>, vector<8x16xf32>,
    return
  }
  func.func @transform_0(%arg0: i32) -> (i32, i32) {
    %c0_i32 = arith.constant 0 : i32
    %c0_i32_0 = arith.constant 0 : i32
    return %arg0, %c0_i32 : i32, i32
  }
  func.func @transform_1(%arg0: i32) -> (i32, i32) {
    %c0_i32 = arith.constant 0 : i32
    %c0_i32_0 = arith.constant 0 : i32
    %c0_i32_1 = arith.constant 0 : i32
    return %c0_i32, %c0_i32_0 : i32, i32
  }
  func.func @transform_2(%arg0: i32) -> (i32, i32) {
    %c0_i32 = arith.constant 0 : i32
    %c0_i32_0 = arith.constant 0 : i32
    %c0_i32_1 = arith.constant 0 : i32
    return %c0_i32, %c0_i32_0 : i32, i32
  }
  func.func @transform_3(%arg0: i32) -> (i32, i32) {
    %c0_i32 = arith.constant 0 : i32
    %c0_i32_0 = arith.constant 0 : i32
    %c0_i32_1 = arith.constant 0 : i32
    return %c0_i32, %c0_i32_0 : i32, i32
  }
  func.func @transform_4(%arg0: i32) -> (i32, i32) {
    %c0_i32 = arith.constant 0 : i32
    %c0_i32_0 = arith.constant 0 : i32
    %c0_i32_1 = arith.constant 0 : i32
    return %c0_i32, %c0_i32_0 : i32, i32
  }
  func.func @transform_5(%arg0: i32) -> (i32, i32) {
    %c0_i32 = arith.constant 0 : i32
    %c0_i32_0 = arith.constant 0 : i32
    return %arg0, %c0_i32 : i32, i32
  }
}

module attributes {stable_mosaic.version = 11 : i64} {
  func.func @_mlp_kernel(%arg0: i32, %arg1: memref<8x32xf32, #tpu.memory_space<vmem>>, %arg2: memref<32x128xbf16, #tpu.memory_space<vmem>>, %arg3: memref<1x128xf32, #tpu.memory_space<vmem>>, %arg4: memref<128x16xbf16, #tpu.memory_space<vmem>>, %arg5: memref<1x16xf32, #tpu.memory_space<vmem>>, %arg6: memref<8x16xf32, #tpu.memory_space<vmem>>) attributes {dimension_semantics = [#tpu.dimension_semantics<parallel>], iteration_bounds = array<i64: 1>, scalar_prefetch = 0 : i64, scratch_operands = 0 : i64, tpu.core_type = #tpu.core_type<tc>, window_params = [{transform_indices = @transform_0, window_bounds = array<i64: 8, 32>}, {pipeline_mode = #tpu.pipeline_mode<synchronous>, transform_indices = @transform_1, window_bounds = array<i64: 32, 128>}, {pipeline_mode = #tpu.pipeline_mode<synchronous>, transform_indices = @transform_2, window_bounds = array<i64: 1, 128>}, {pipeline_mode = #tpu.pipeline_mode<synchronous>, transform_indices = @transform_3, window_bounds = array<i64: 128, 16>}, {pipeline_mode = #tpu.pipeline_mode<synchronous>, transform_indices = @transform_4, window_bounds = array<i64: 1, 16>}, {transform_indices = @transform_5, window_bounds = array<i64: 8, 16>}]} {
    %c0 = arith.constant 0 : index
    %c0_0 = arith.constant 0 : index
    %0 = vector.load %arg1[%c0, %c0_0] : memref<8x32xf32, #tpu.memory_space<vmem>>, vector<8x32xf32>
    %1 = arith.truncf %0 : vector<8x32xf32> to vector<8x32xbf16>
    %c0_1 = arith.constant 0 : index
    %c0_2 = arith.constant 0 : index
    %2 = vector.load %arg2[%c0_1, %c0_2] : memref<32x128xbf16, #tpu.memory_space<vmem>>, vector<32x128xbf16>
    %cst = arith.constant dense<0.000000e+00> : vector<8x128xf32>
    %3 = tpu.matmul %1, %2, %cst {dimension_numbers = #tpu.dot_dimension_numbers<[1], [0], [0], [1], [0, 0, 1, 1], [], []>} : vector<8x32xbf16>, vector<32x128xbf16>, vector<8x128xf32> -> vector<8x128xf32>
    %c0_3 = arith.constant 0 : index
    %c0_4 = arith.constant 0 : index
    %4 = vector.load %arg3[%c0_3, %c0_4] : memref<1x128xf32, #tpu.memory_space<vmem>>, vector<1x128xf32>
    %5 = vector.broadcast %4 : vector<1x128xf32> to vector<8x128xf32>
    %6 = arith.addf %3, %5 : vector<8x128xf32>
    %cst_5 = arith.constant 0.000000e+00 : f32
    %7 = vector.broadcast %cst_5 : f32 to vector<8x128xf32>
    %8 = arith.maximumf %6, %7 : vector<8x128xf32>
    %9 = arith.truncf %8 : vector<8x128xf32> to vector<8x128xbf16>
    %c0_6 = arith.constant 0 : index
    %c0_7 = arith.constant 0 : index
    %10 = vector.load %arg4[%c0_6, %c0_7] : memref<128x16xbf16, #tpu.memory_space<vmem>>, vector<128x16xbf16>
    %cst_8 = arith.constant dense<0.000000e+00> : vector<8x16xf32>
    %11 = tpu.matmul %9, %10, %cst_8 {dimension_numbers = #tpu.dot_dimension_numbers<[1], [0], [0], [1], [0, 0, 1, 1], [], []>} : vector<8x128xbf16>, vector<128x16xbf16>, vector<8x16xf32> -> vector<8x16xf32>
    %c0_9 = arith.constant 0 : index
    %c0_10 = arith.constant 0 : index
    %12 = vector.load %arg5[%c0_9, %c0_10] : memref<1x16xf32, #tpu.memory_space<vmem>>, vector<1x16xf32>
    %13 = vector.broadcast %12 : vector<1x16xf32> to vector<8x16xf32>
    %14 = arith.addf %11, %13 : vector<8x16xf32>
    %15 = arith.negf %14 : vector<8x16xf32>
    %16 = math.exp %15 : vector<8x16xf32>
    %cst_11 = arith.constant 1.000000e+00 : f32
    %17 = vector.broadcast %cst_11 : f32 to vector<8x16xf32>
    %18 = arith.addf %17, %16 : vector<8x16xf32>
    %19 = arith.divf %17, %18 : vector<8x16xf32>
    %c0_12 = arith.constant 0 : index
    %c0_13 = arith.constant 0 : index
    %20 = vector.load %arg6[%c0_12, %c0_13] : memref<8x16xf32, #tpu.memory_space<vmem>>, vector<8x16xf32>
    tpu.vector_store %arg6[%c0_12, %c0_13], %19 {strides = array<i32>} : memref<8x16xf32, #tpu.memory_space<vmem>>, vector<8x16xf32>,
    return
  }
  func.func @transform_0(%arg0: i32) -> (i32, i32) {
    %c0_i32 = arith.constant 0 : i32
    %c0_i32_0 = arith.constant 0 : i32
    return %arg0, %c0_i32 : i32, i32
  }
  func.func @transform_1(%arg0: i32) -> (i32, i32) {
    %c0_i32 = arith.constant 0 : i32
    %c0_i32_0 = arith.constant 0 : i32
    %c0_i32_1 = arith.constant 0 : i32
    return %c0_i32, %c0_i32_0 : i32, i32
  }
  func.func @transform_2(%arg0: i32) -> (i32, i32) {
    %c0_i32 = arith.constant 0 : i32
    %c0_i32_0 = arith.constant 0 : i32
    %c0_i32_1 = arith.constant 0 : i32
    return %c0_i32, %c0_i32_0 : i32, i32
  }
  func.func @transform_3(%arg0: i32) -> (i32, i32) {
    %c0_i32 = arith.constant 0 : i32
    %c0_i32_0 = arith.constant 0 : i32
    %c0_i32_1 = arith.constant 0 : i32
    return %c0_i32, %c0_i32_0 : i32, i32
  }
  func.func @transform_4(%arg0: i32) -> (i32, i32) {
    %c0_i32 = arith.constant 0 : i32
    %c0_i32_0 = arith.constant 0 : i32
    %c0_i32_1 = arith.constant 0 : i32
    return %c0_i32, %c0_i32_0 : i32, i32
  }
  func.func @transform_5(%arg0: i32) -> (i32, i32) {
    %c0_i32 = arith.constant 0 : i32
    %c0_i32_0 = arith.constant 0 : i32
    return %arg0, %c0_i32 : i32, i32
  }
}

</mosaic_0001>

<bundles_post_ra>
// kernel: tpu_custom_call.1
= control target key start
LH: loop header
LB: loop body
LE: loop exit
PB: predicated region body
PF: predicated region fallthrough
CT: control target
= control target key end

     0   :  { %v319_v1 = vmov 0.0   ;;  %vm320_vm0 = vmmov 0   ;;  %vm47_vm1 = vcmask 261120   ;;  %s394_s0 = inlined_call_operand.vmem [shape: f32[8,32], index: 0, kind: input, shape index: {}]   ;;  %s395_s1 = inlined_call_operand.vmem [shape: bf16[32,128], index: 1, kind: input, shape index: {}]   ;;  %s396_s2 = inlined_call_operand.vmem [shape: f32[1,128], index: 2, kind: input, shape index: {}]   ;;  %s397_s3 = inlined_call_operand.vmem [shape: bf16[128,16], index: 3, kind: input, shape index: {}]   ;;  %s398_s4 = inlined_call_operand.vmem [shape: f32[1,16], index: 4, kind: input, shape index: {}]   ;;  %s399_s5 = inlined_call_operand.hbm [shape: f32[8,16], index: 5, kind: output, shape index: {}]  }
   0x1   :  { %v283_v0 = vld [vmem:[%s395_s1 + $0x8] sm:$0xff]   ;;  %252 = vmatprep.subr.bf16.mxu0 %v319_v1  ;;  %v284_v2 = vld [vmem:[%s395_s1] sm:$0xff]   ;;  %260 = vmatprep.subr.bf16.mxu1 %v319_v1  ;;  %v285_v4 = vld [vmem:[%s397_s3 + $0x38] sm:$0xff]  }
   0x2   :  { %253 = vmatpush3.bf16.msra.mxu0 %v283_v0  ;;  %256 = vmatprep.mubr.msk.bf16.mxu0 %vm320_vm0, %v319_v1  ;;  %v22_v3 = vld [vmem:[%s394_s0] sm:$0xff]  ;;  %v286_v6 = vld [vmem:[%s397_s3 + $0x30] sm:$0xff]   ;;  %v287_v7 = vld [vmem:[%s397_s3 + $0x28] sm:$0xff]  }
   0x3   :  { %254 = vmatprep.subr.bf16.mxu0 %v319_v1  ;;  %276 = vmatprep.mubr.msk.bf16.mxu1 %vm320_vm0, %v319_v1  ;;  %v23_v5 = vpack.c.bf16 %v22_v3, %v22_v3 }
   0x4   :  { %261 = vmatpush3.bf16.msra.mxu1 %v285_v4 }
   0x5   :  { %262 = vmatprep.subr.bf16.mxu1 %v319_v1 }
   0x6   :  { %255 = vmatpush3.bf16.msra.mxu0 %v284_v2 }
   0x8   :  { %263 = vmatpush3.bf16.msra.mxu1 %v286_v6 }
   0x9   :  { %257 = vmatmul.mubr.msk.bf16.vlgmr.msra.gmra.mxu0 %vm47_vm1, %v23_v5  ;;  %264 = vmatprep.subr.bf16.mxu1 %v319_v1 }
   0xa   :  { %10 = vsyncpa [#allocation3], 0  ;;  %v288_v8 = vld [vmem:[%s397_s3 + $0x20] sm:$0xff]   ;;  %v289_v9 = vld [vmem:[%s397_s3 + $0x18] sm:$0xff]   ;;  %vm210_vm2 = vcmask 130048  }
   0xb   :  { %v290_v10 = vld [vmem:[%s397_s3 + $0x10] sm:$0xff]   ;;  %v291_v11 = vld [vmem:[%s397_s3 + $0x8] sm:$0xff]   ;;  %v292_v12 = vld [vmem:[%s397_s3] sm:$0xff]  }
   0xc   :  { %265 = vmatpush3.bf16.msra.mxu1 %v287_v7  ;;  %v226_v13 = vld [vmem:[%s396_s2] ss:$0 sm:$0xff]  ;;  %s321_s2 = smov [#allocation2]  }
   0xd   :  { %266 = vmatprep.subr.bf16.mxu1 %v319_v1  ;;  %v230_v21 = vld [vmem:[%s398_s4] ss:$0 sm:$0xff]  ;;  %s218_s3 = sshll.u32 %s321_s2, 4  ;;  %s219_s3 = int_to_ptr.vmem [resolvable:$true] %s218_s3 }
   0xe   :  { %s297_s17 = scalar_lea.vmem %s219_s3, 128  ;;  %p302_p1 = scmp.lt.s32.totalorder %s219_s3, %s219_s3 }
   0xf   :  { %p298_p0 = scmp.ne.s32.totalorder %s219_s3, %s297_s17  ;;  %p303_p2 = scmp.lt.s32.totalorder %s297_s17, %s297_s17 }
  0x10   :  { %267 = vmatpush3.bf16.msra.mxu1 %v288_v8 }
  0x11   :  { %268 = vmatprep.subr.bf16.mxu1 %v319_v1  ;;  %p304_p3 = por %p303_p2, %p302_p1 }
  0x13   :  { %p305_p4 = pnand %p304_p3, %p298_p0 }
  0x14   :  { %269 = vmatpush3.bf16.msra.mxu1 %v289_v9 }
  0x15   :  { %270 = vmatprep.subr.bf16.mxu1 %v319_v1 }
  0x18   :  { %271 = vmatpush3.bf16.msra.mxu1 %v290_v10 }
  0x19   :  { %272 = vmatprep.subr.bf16.mxu1 %v319_v1 }
  0x1c   :  { %273 = vmatpush3.bf16.msra.mxu1 %v291_v11 }
  0x1d   :  { %274 = vmatprep.subr.bf16.mxu1 %v319_v1 }
  0x20   :  { %275 = vmatpush3.bf16.msra.mxu1 %v292_v12 }
  0xc9   :  { %v85_v14 = vpop.f32.mrf.mxu0 }
  0xca   :  { %v86_v15 = vadd.f32 %v226_v13, %v85_v14 }
  0xcb   :  { %v258_v16 = vpop.f32.mrf.mxu0 }
  0xcc   :  { %v91_v17 = vmax.f32 %v86_v15, 0.0 }
  0xcd   :  { %v88_v18 = vpop.f32.mrf.mxu0 }
  0xce   :  { %v92_v19 = vpack.c.bf16 %v91_v17, %v91_v17 }
  0xcf   :  { %v259_v20 = vpop.f32.mrf.mxu0 }
  0xd0   :  { %277 = vmatmul.mubr.bf16.vlgmr.msra.gmra.mxu1 %v92_v19 }
 0x190   :  { %v198_v22 = vpop.f32.mrf.mxu1 }
 0x191   :  { %v199_v23 = vadd.f32 %v230_v21, %v198_v22 }
 0x192   :  { %v278_v24 = vpop.f32.mrf.mxu1 }
 0x193   :  { %v239_v25 = vmul.f32 -1.442695, %v199_v23 }
 0x194   :  { %v201_v26 = vpop.f32.mrf.mxu1 }
 0x195   :  { %293 = vpow2.f32 %v239_v25 }
 0x196   :  { %v279_v27 = vpop.f32.mrf.mxu1 }
 0x1a2   :  { %v294_v28 = vpop.eup %293 }
 0x1a3   :  { %v207_v29 = vadd.f32 1.0, %v294_v28 }
 0x1a5   :  { %295 = vrcp.f32 %v207_v29 }
 0x1b2   :  { %v296_v30 = vpop.eup %295 }
 0x1b3   :  { %211 = vst.msk [vmem:[#allocation2] sm:$0xff] %vm210_vm2, %v296_v30 }
 0x1b4   :  { %308 = shalt.err (!%p305_p4)
}
 0x1b5   :  { %221 = dma.vmem_to_hbm [thread:$0]  %s219_s3, 128, %s399_s5, [#allocation3]  }
 0x1b6   :  { %317 = dma.done.wait [#allocation3], 128  }
 0x1b7   :  { %318 = vsyncadd [#allocation3], 4294967168 }
 0x1b8   :  { %225 = vsyncpa [#allocation3], 1 }

// kernel: tpu_custom_call.1
= control target key start
LH: loop header
LB: loop body
LE: loop exit
PB: predicated region body
PF: predicated region fallthrough
CT: control target
= control target key end

     0   :  { %v319_v1 = vmov 0.0   ;;  %vm320_vm0 = vmmov 0   ;;  %vm47_vm1 = vcmask 261120   ;;  %s394_s0 = inlined_call_operand.vmem [shape: f32[8,32], index: 0, kind: input, shape index: {}]   ;;  %s395_s1 = inlined_call_operand.vmem [shape: bf16[32,128], index: 1, kind: input, shape index: {}]   ;;  %s396_s2 = inlined_call_operand.vmem [shape: f32[1,128], index: 2, kind: input, shape index: {}]   ;;  %s397_s3 = inlined_call_operand.vmem [shape: bf16[128,16], index: 3, kind: input, shape index: {}]   ;;  %s398_s4 = inlined_call_operand.vmem [shape: f32[1,16], index: 4, kind: input, shape index: {}]   ;;  %s399_s5 = inlined_call_operand.hbm [shape: f32[8,16], index: 5, kind: output, shape index: {}]  }
   0x1   :  { %v283_v0 = vld [vmem:[%s395_s1 + $0x8] sm:$0xff]   ;;  %252 = vmatprep.subr.bf16.mxu0 %v319_v1  ;;  %v284_v2 = vld [vmem:[%s395_s1] sm:$0xff]   ;;  %260 = vmatprep.subr.bf16.mxu1 %v319_v1  ;;  %v285_v4 = vld [vmem:[%s397_s3 + $0x38] sm:$0xff]  }
   0x2   :  { %253 = vmatpush3.bf16.msra.mxu0 %v283_v0  ;;  %256 = vmatprep.mubr.msk.bf16.mxu0 %vm320_vm0, %v319_v1  ;;  %v22_v3 = vld [vmem:[%s394_s0] sm:$0xff]  ;;  %v286_v6 = vld [vmem:[%s397_s3 + $0x30] sm:$0xff]   ;;  %v287_v7 = vld [vmem:[%s397_s3 + $0x28] sm:$0xff]  }
   0x3   :  { %254 = vmatprep.subr.bf16.mxu0 %v319_v1  ;;  %276 = vmatprep.mubr.msk.bf16.mxu1 %vm320_vm0, %v319_v1  ;;  %v23_v5 = vpack.c.bf16 %v22_v3, %v22_v3 }
   0x4   :  { %261 = vmatpush3.bf16.msra.mxu1 %v285_v4 }
   0x5   :  { %262 = vmatprep.subr.bf16.mxu1 %v319_v1 }
   0x6   :  { %255 = vmatpush3.bf16.msra.mxu0 %v284_v2 }
   0x8   :  { %263 = vmatpush3.bf16.msra.mxu1 %v286_v6 }
   0x9   :  { %257 = vmatmul.mubr.msk.bf16.vlgmr.msra.gmra.mxu0 %vm47_vm1, %v23_v5  ;;  %264 = vmatprep.subr.bf16.mxu1 %v319_v1 }
   0xa   :  { %10 = vsyncpa [#allocation3], 0  ;;  %v288_v8 = vld [vmem:[%s397_s3 + $0x20] sm:$0xff]   ;;  %v289_v9 = vld [vmem:[%s397_s3 + $0x18] sm:$0xff]   ;;  %vm210_vm2 = vcmask 130048  }
   0xb   :  { %v290_v10 = vld [vmem:[%s397_s3 + $0x10] sm:$0xff]   ;;  %v291_v11 = vld [vmem:[%s397_s3 + $0x8] sm:$0xff]   ;;  %v292_v12 = vld [vmem:[%s397_s3] sm:$0xff]  }
   0xc   :  { %265 = vmatpush3.bf16.msra.mxu1 %v287_v7  ;;  %v226_v13 = vld [vmem:[%s396_s2] ss:$0 sm:$0xff]  ;;  %s321_s2 = smov [#allocation2]  }
   0xd   :  { %266 = vmatprep.subr.bf16.mxu1 %v319_v1  ;;  %v230_v21 = vld [vmem:[%s398_s4] ss:$0 sm:$0xff]  ;;  %s218_s3 = sshll.u32 %s321_s2, 4  ;;  %s219_s3 = int_to_ptr.vmem [resolvable:$true] %s218_s3 }
   0xe   :  { %s297_s17 = scalar_lea.vmem %s219_s3, 128  ;;  %p302_p1 = scmp.lt.s32.totalorder %s219_s3, %s219_s3 }
   0xf   :  { %p298_p0 = scmp.ne.s32.totalorder %s219_s3, %s297_s17  ;;  %p303_p2 = scmp.lt.s32.totalorder %s297_s17, %s297_s17 }
  0x10   :  { %267 = vmatpush3.bf16.msra.mxu1 %v288_v8 }
  0x11   :  { %268 = vmatprep.subr.bf16.mxu1 %v319_v1  ;;  %p304_p3 = por %p303_p2, %p302_p1 }
  0x13   :  { %p305_p4 = pnand %p304_p3, %p298_p0 }
  0x14   :  { %269 = vmatpush3.bf16.msra.mxu1 %v289_v9 }
  0x15   :  { %270 = vmatprep.subr.bf16.mxu1 %v319_v1 }
  0x18   :  { %271 = vmatpush3.bf16.msra.mxu1 %v290_v10 }
  0x19   :  { %272 = vmatprep.subr.bf16.mxu1 %v319_v1 }
  0x1c   :  { %273 = vmatpush3.bf16.msra.mxu1 %v291_v11 }
  0x1d   :  { %274 = vmatprep.subr.bf16.mxu1 %v319_v1 }
  0x20   :  { %275 = vmatpush3.bf16.msra.mxu1 %v292_v12 }
  0xc9   :  { %v85_v14 = vpop.f32.mrf.mxu0 }
  0xca   :  { %v86_v15 = vadd.f32 %v226_v13, %v85_v14 }
  0xcb   :  { %v258_v16 = vpop.f32.mrf.mxu0 }
  0xcc   :  { %v91_v17 = vmax.f32 %v86_v15, 0.0 }
  0xcd   :  { %v88_v18 = vpop.f32.mrf.mxu0 }
  0xce   :  { %v92_v19 = vpack.c.bf16 %v91_v17, %v91_v17 }
  0xcf   :  { %v259_v20 = vpop.f32.mrf.mxu0 }
  0xd0   :  { %277 = vmatmul.mubr.bf16.vlgmr.msra.gmra.mxu1 %v92_v19 }
 0x190   :  { %v198_v22 = vpop.f32.mrf.mxu1 }
 0x191   :  { %v199_v23 = vadd.f32 %v230_v21, %v198_v22 }
 0x192   :  { %v278_v24 = vpop.f32.mrf.mxu1 }
 0x193   :  { %v239_v25 = vmul.f32 -1.442695, %v199_v23 }
 0x194   :  { %v201_v26 = vpop.f32.mrf.mxu1 }
 0x195   :  { %293 = vpow2.f32 %v239_v25 }
 0x196   :  { %v279_v27 = vpop.f32.mrf.mxu1 }
 0x1a2   :  { %v294_v28 = vpop.eup %293 }
 0x1a3   :  { %v207_v29 = vadd.f32 1.0, %v294_v28 }
 0x1a5   :  { %295 = vrcp.f32 %v207_v29 }
 0x1b2   :  { %v296_v30 = vpop.eup %295 }
 0x1b3   :  { %211 = vst.msk [vmem:[#allocation2] sm:$0xff] %vm210_vm2, %v296_v30 }
 0x1b4   :  { %308 = shalt.err (!%p305_p4)
}
 0x1b5   :  { %221 = dma.vmem_to_hbm [thread:$0]  %s219_s3, 128, %s399_s5, [#allocation3]  }
 0x1b6   :  { %317 = dma.done.wait [#allocation3], 128  }
 0x1b7   :  { %318 = vsyncadd [#allocation3], 4294967168 }
 0x1b8   :  { %225 = vsyncpa [#allocation3], 1 }

</bundles_post_ra>
